<compile_context>
chip_gen: v7x
topology: tpu7x:2x2x1
jax: 0.10.0
libtpu: 0.0.40
codegen_flags: <defaults>
</compile_context>

<pallas_src>
import functools

import numpy as np
import jax
import jax.numpy as jnp
from jax.experimental import pallas as pl
from jax.experimental.pallas import tpu as pltpu


def _round_up(x, m):
    return (x + m - 1) // m * m


def _pick_tile(dim_padded, candidates):
    for c in candidates:
        if dim_padded % c == 0:
            return c
    return candidates[-1]


# ----------------------------- Pallas kernel: tiled matmul + bias + ReLU -----------------------------

def _matmul_bias_act_kernel(a_ref, b_ref, bias_ref, o_ref, acc_ref, *, relu):
    k = pl.program_id(2)

    @pl.when(k == 0)
    def _():
        acc_ref[...] = jnp.zeros_like(acc_ref)

    acc_ref[...] += jnp.dot(a_ref[...], b_ref[...], preferred_element_type=jnp.float32)

    @pl.when(k == pl.num_programs(2) - 1)
    def _():
        res = acc_ref[...] + bias_ref[...]          # bias: (1, tn) broadcast over rows
        if relu:
            res = jnp.maximum(res, 0.0)
        o_ref[...] = res


def matmul_bias(a, b_p, bias_p, n_out, *, relu):
    """relu?(a @ b + bias).

    a      : (M, K)  any float dtype (cast to bf16 for the MXU).
    b_p    : (Kp, Np) bf16, Kp/Np already padded to multiples of 128 (done at init).
    bias_p : (1, Np)  f32, padded to match b_p.
    n_out  : logical output width (<= Np); result is (M, n_out) f32.
    """
    M, K = a.shape
    Kp, Np = b_p.shape
    assert K <= Kp

    # Tile selection: big, 128-aligned N/K tiles; M padded to a 16-multiple (bf16 sublanes).
    if M >= 256:
        tm = 256
        Mp = _round_up(M, tm)
    else:
        tm = max(16, _round_up(M, 16))
        Mp = tm
    tk = _pick_tile(Kp, (512, 256, 128))
    tn = _pick_tile(Np, (256, 128))

    a_p = jnp.pad(a, ((0, Mp - M), (0, Kp - K))).astype(jnp.bfloat16)

    grid = (Mp // tm, Np // tn, Kp // tk)
    out = pl.pallas_call(
        functools.partial(_matmul_bias_act_kernel, relu=relu),
        out_shape=jax.ShapeDtypeStruct((Mp, Np), jnp.float32),
        grid_spec=pltpu.PrefetchScalarGridSpec(
            num_scalar_prefetch=0,
            grid=grid,
            in_specs=[
                pl.BlockSpec((tm, tk), lambda i, j, k: (i, k)),
                pl.BlockSpec((tk, tn), lambda i, j, k: (k, j)),
                pl.BlockSpec((1, tn), lambda i, j, k: (0, j)),   # bias ignores k
            ],
            out_specs=pl.BlockSpec((tm, tn), lambda i, j, k: (i, j)),
            scratch_shapes=[pltpu.VMEM((tm, tn), jnp.float32)],
        ),
        compiler_params=pltpu.CompilerParams(
            dimension_semantics=("parallel", "parallel", "arbitrary"),
        ),
    )(a_p, b_p, bias_p)
    return out[:M, :n_out]


# ----------------------------- layers (XLA glue + kernel calls) -----------------------------

def conv2d(x, w_mat, bias_row, cout, kh, kw, *, stride, pad, relu):
    """x: NHWC f32. w_mat: (Kp, Np) bf16 padded weight matrix (tap-major, Cin-minor)."""
    N, H, W, C = x.shape
    xp = jnp.pad(x, ((0, 0), (pad, pad), (pad, pad), (0, 0)))
    OH = (H + 2 * pad - kh) // stride + 1
    OW = (W + 2 * pad - kw) // stride + 1
    patches = []
    for i in range(kh):
        for j in range(kw):
            patches.append(
                xp[:, i:i + stride * (OH - 1) + 1:stride,
                      j:j + stride * (OW - 1) + 1:stride, :])
    cols = jnp.stack(patches, axis=3).reshape(N * OH * OW, kh * kw * C)   # im2col
    out = matmul_bias(cols, w_mat, bias_row, cout, relu=relu)
    return out.reshape(N, OH, OW, cout)


def maxpool_3x3_s2(x):
    """MaxPool2d(kernel=3, stride=2) as a fused XLA maximum tree (no HBM window stack)."""
    N, H, W, C = x.shape
    OH = (H - 3) // 2 + 1
    OW = (W - 3) // 2 + 1
    out = None
    for i in range(3):
        for j in range(3):
            win = x[:, i:i + 2 * (OH - 1) + 1:2, j:j + 2 * (OW - 1) + 1:2, :]
            out = win if out is None else jnp.maximum(out, win)
    return out


def maxpool_square(x, p):
    """MaxPool2d(p, p) (non-overlapping)."""
    N, H, W, C = x.shape
    OH, OW = H // p, W // p
    xr = x[:, :OH * p, :OW * p, :].reshape(N, OH, p, OW, p, C)
    return jnp.max(xr, axis=(2, 4))


def adaptive_avg_pool(x, OH, OW):
    """PyTorch AdaptiveAvgPool2d as a static pooling matrix; lane-preserving einsum."""
    N, H, W, C = x.shape
    M = np.zeros((OH * OW, H * W), np.float32)
    for oh in range(OH):
        hs = (oh * H) // OH
        he = -((-(oh + 1) * H) // OH)
        for ow in range(OW):
            ws = (ow * W) // OW
            we = -((-(ow + 1) * W) // OW)
            cnt = (he - hs) * (we - ws)
            for h in range(hs, he):
                for w in range(ws, we):
                    M[oh * OW + ow, h * W + w] = 1.0 / cnt
    out = jnp.einsum('pq,nqc->npc', jnp.asarray(M), x.reshape(N, H * W, C))
    return out.reshape(N, OH, OW, C)


# ----------------------------- model -----------------------------

_CONV_CFGS = [
    # (KH, KW, Cin, Cout, stride, pad)
    (11, 11, 3, 64, 4, 2),
    (5, 5, 64, 192, 1, 2),
    (3, 3, 192, 384, 1, 1),
    (3, 3, 384, 512, 1, 1),
    (3, 3, 512, 512, 1, 1),
]
_NUM_CLASSES = 48
_POOL_SIZE = 4


def init_params(key):
    convs = []
    for (kh, kw, cin, cout, _, _) in _CONV_CFGS:
        key, k_w, k_b = jax.random.split(key, 3)
        fan_in = kh * kw * cin
        bound = 1.0 / np.sqrt(fan_in)
        w = jax.random.uniform(k_w, (kh, kw, cin, cout), jnp.float32, -bound, bound)
        b = jax.random.uniform(k_b, (cout,), jnp.float32, -bound, bound)
        convs.append((w, b))
    key, k_w, k_b = jax.random.split(key, 3)
    bound = 1.0 / np.sqrt(512)
    fc_w = jax.random.uniform(k_w, (512, _NUM_CLASSES), jnp.float32, -bound, bound)
    fc_b = jax.random.uniform(k_b, (_NUM_CLASSES,), jnp.float32, -bound, bound)
    return {"convs": convs, "fc": (fc_w, fc_b)}


def prepare_params(raw):
    """Pad weights (K, N -> 128-multiples) and cast to bf16 ONCE, outside the forward path."""
    convs = []
    for (w, b) in raw["convs"]:
        kh, kw, cin, cout = w.shape
        K = kh * kw * cin
        Kp, Np = _round_up(K, 128), _round_up(cout, 128)
        wm = jnp.pad(w.reshape(K, cout), ((0, Kp - K), (0, Np - cout))).astype(jnp.bfloat16)
        br = jnp.pad(b.astype(jnp.float32).reshape(1, -1), ((0, 0), (0, Np - cout)))
        convs.append((wm, br, cout, kh, kw))
    fc_w, fc_b = raw["fc"]
    K, n_out = fc_w.shape
    Kp, Np = _round_up(K, 128), _round_up(n_out, 128)
    fwm = jnp.pad(fc_w, ((0, Kp - K), (0, Np - n_out))).astype(jnp.bfloat16)
    fbr = jnp.pad(fc_b.astype(jnp.float32).reshape(1, -1), ((0, 0), (0, Np - n_out)))
    return {"convs": convs, "fc": (fwm, fbr, n_out)}


def pollen_cls_forward(x_nchw, prepared):
    """PollenClsNet.forward with the AlexBase encoder (modelName='alex' path)."""
    convs, (fc_w, fc_b, fc_out) = prepared["convs"], prepared["fc"]
    x = jnp.transpose(x_nchw, (0, 2, 3, 1)).astype(jnp.float32)   # NCHW -> NHWC

    # AlexBase.features
    x = conv2d(x, *convs[0], stride=4, pad=2, relu=True)
    x = maxpool_3x3_s2(x)
    x = conv2d(x, *convs[1], stride=1, pad=2, relu=True)
    x = maxpool_3x3_s2(x)
    x = conv2d(x, *convs[2], stride=1, pad=1, relu=True)
    x = conv2d(x, *convs[3], stride=1, pad=1, relu=True)
    x = conv2d(x, *convs[4], stride=1, pad=1, relu=True)
    x = maxpool_3x3_s2(x)
    # AlexBase.avgpool: AdaptiveAvgPool2d((4, 4))
    x = adaptive_avg_pool(x, 4, 4)

    # PollenClsNet head: MaxPool2d(4, 4) -> view(-1, C) -> Linear(512, 48)
    x = maxpool_square(x, _POOL_SIZE)         # (N, 1, 1, 512)
    N = x.shape[0]
    x = x.reshape(N, x.shape[-1])             # (N, 512)  (spatial is 1x1 here)
    logits = matmul_bias(x, fc_w, fc_b, fc_out, relu=False)
    return logits                              # (N, 48)


if __name__ == "__main__":
    key = jax.random.PRNGKey(0)
    kx, kp = jax.random.split(key)
    # Smallest comfortable spatial size for the AlexNet stem (stride-4, k=11 conv).
    x = jax.random.normal(kx, (2, 3, 64, 64), jnp.float32)
    params = prepare_params(init_params(kp))
    out = pollen_cls_forward(x, params)
    out = jax.block_until_ready(out)
    assert out.shape == (2, _NUM_CLASSES), out.shape
    assert bool(jnp.all(jnp.isfinite(out)))
    print("KERNEL_OK")
</pallas_src>

<mosaic_0001>
module attributes {stable_mosaic.version = 11 : i64} {
  func.func @_matmul_bias_act_kernel(%arg0: i32, %arg1: i32, %arg2: i32, %arg3: memref<256x128xbf16, #tpu.memory_space<vmem>>, %arg4: memref<128x128xbf16, #tpu.memory_space<vmem>>, %arg5: memref<1x128xf32, #tpu.memory_space<vmem>>, %arg6: memref<256x128xf32, #tpu.memory_space<vmem>>, %arg7: memref<256x128xf32, #tpu.memory_space<vmem>>) attributes {dimension_semantics = [#tpu.dimension_semantics<parallel>, #tpu.dimension_semantics<parallel>, #tpu.dimension_semantics<arbitrary>], iteration_bounds = array<i64: 2, 1, 3>, scalar_prefetch = 0 : i64, scratch_operands = 1 : i64, tpu.core_type = #tpu.core_type<tc>, window_params = [{transform_indices = @transform_0, window_bounds = array<i64: 256, 128>}, {transform_indices = @transform_1, window_bounds = array<i64: 128, 128>}, {transform_indices = @transform_2, window_bounds = array<i64: 1, 128>}, {transform_indices = @transform_3, window_bounds = array<i64: 256, 128>}]} {
    %c0_i32 = arith.constant 0 : i32
    %0 = arith.cmpi eq, %arg2, %c0_i32 : i32
    %1 = arith.extui %0 : i1 to i32
    %c0_i32_0 = arith.constant 0 : i32
    %2 = arith.cmpi ne, %1, %c0_i32_0 : i32
    scf.if %2 {
      %cst_9 = arith.constant 0.000000e+00 : f32
      %12 = vector.broadcast %cst_9 : f32 to vector<256x128xf32>
      %c0_10 = arith.constant 0 : index
      %c0_11 = arith.constant 0 : index
      %13 = vector.load %arg7[%c0_10, %c0_11] : memref<256x128xf32, #tpu.memory_space<vmem>>, vector<256x128xf32>
      tpu.vector_store %arg7[%c0_10, %c0_11], %12 {strides = array<i32>} : memref<256x128xf32, #tpu.memory_space<vmem>>, vector<256x128xf32>,
    } else {
    }
    %c0 = arith.constant 0 : index
    %c0_1 = arith.constant 0 : index
    %3 = vector.load %arg7[%c0, %c0_1] : memref<256x128xf32, #tpu.memory_space<vmem>>, vector<256x128xf32>
    %c0_2 = arith.constant 0 : index
    %c0_3 = arith.constant 0 : index
    %4 = vector.load %arg3[%c0_2, %c0_3] : memref<256x128xbf16, #tpu.memory_space<vmem>>, vector<256x128xbf16>
    %c0_4 = arith.constant 0 : index
    %c0_5 = arith.constant 0 : index
    %5 = vector.load %arg4[%c0_4, %c0_5] : memref<128x128xbf16, #tpu.memory_space<vmem>>, vector<128x128xbf16>
    %cst = arith.constant dense<0.000000e+00> : vector<256x128xf32>
    %6 = tpu.matmul %4, %5, %cst {dimension_numbers = #tpu.dot_dimension_numbers<[1], [0], [0], [1], [0, 0, 1, 1], [], []>} : vector<256x128xbf16>, vector<128x128xbf16>, vector<256x128xf32> -> vector<256x128xf32>
    %7 = arith.addf %3, %6 : vector<256x128xf32>
    %c0_6 = arith.constant 0 : index
    %c0_7 = arith.constant 0 : index
    %8 = vector.load %arg7[%c0_6, %c0_7] : memref<256x128xf32, #tpu.memory_space<vmem>>, vector<256x128xf32>
    tpu.vector_store %arg7[%c0_6, %c0_7], %7 {strides = array<i32>} : memref<256x128xf32, #tpu.memory_space<vmem>>, vector<256x128xf32>,
    %c2_i32 = arith.constant 2 : i32
    %9 = arith.cmpi eq, %arg2, %c2_i32 : i32
    %10 = arith.extui %9 : i1 to i32
    %c0_i32_8 = arith.constant 0 : i32
    %11 = arith.cmpi ne, %10, %c0_i32_8 : i32
    scf.if %11 {
      %c0_9 = arith.constant 0 : index
      %c0_10 = arith.constant 0 : index
      %12 = vector.load %arg7[%c0_9, %c0_10] : memref<256x128xf32, #tpu.memory_space<vmem>>, vector<256x128xf32>
      %c0_11 = arith.constant 0 : index
      %c0_12 = arith.constant 0 : index
      %13 = vector.load %arg5[%c0_11, %c0_12] : memref<1x128xf32, #tpu.memory_space<vmem>>, vector<1x128xf32>
      %14 = vector.broadcast %13 : vector<1x128xf32> to vector<256x128xf32>
      %15 = arith.addf %12, %14 : vector<256x128xf32>
      %cst_13 = arith.constant 0.000000e+00 : f32
      %16 = vector.broadcast %cst_13 : f32 to vector<256x128xf32>
      %17 = arith.maximumf %15, %16 : vector<256x128xf32>
      %c0_14 = arith.constant 0 : index
      %c0_15 = arith.constant 0 : index
      %18 = vector.load %arg6[%c0_14, %c0_15] : memref<256x128xf32, #tpu.memory_space<vmem>>, vector<256x128xf32>
      tpu.vector_store %arg6[%c0_14, %c0_15], %17 {strides = array<i32>} : memref<256x128xf32, #tpu.memory_space<vmem>>, vector<256x128xf32>,
    } else {
    }
    return
  }
  func.func @transform_0(%arg0: i32, %arg1: i32, %arg2: i32) -> (i32, i32) {
    %c0_i32 = arith.constant 0 : i32
    return %arg0, %arg2 : i32, i32
  }
  func.func @transform_1(%arg0: i32, %arg1: i32, %arg2: i32) -> (i32, i32) {
    %c0_i32 = arith.constant 0 : i32
    return %arg2, %arg1 : i32, i32
  }
  func.func @transform_2(%arg0: i32, %arg1: i32, %arg2: i32) -> (i32, i32) {
    %c0_i32 = arith.constant 0 : i32
    %c0_i32_0 = arith.constant 0 : i32
    return %c0_i32, %arg1 : i32, i32
  }
  func.func @transform_3(%arg0: i32, %arg1: i32, %arg2: i32) -> (i32, i32) {
    %c0_i32 = arith.constant 0 : i32
    return %arg0, %arg1 : i32, i32
  }
}

</mosaic_0001>

<bundles_post_ra>
// kernel: tpu_custom_call.1
= control target key start
LH: loop header
LB: loop body
LE: loop exit
PB: predicated region body
PF: predicated region fallthrough
CT: control target
= control target key end

     0   :  { %s2030_s0 = inlined_call_operand.hbm [shape: bf16[512,384], index: 0, kind: input, shape index: {}]   ;;  %s2031_s1 = inlined_call_operand.hbm [shape: bf16[384,128], index: 1, kind: input, shape index: {}]   ;;  %s2032_s2 = inlined_call_operand.vmem [shape: f32[1,128], index: 2, kind: input, shape index: {}]   ;;  %s2033_s3 = inlined_call_operand.hbm [shape: f32[512,128], index: 3, kind: output, shape index: {}]  }
   0x1   :  { %2046 = sst [smem:[#allocation17_spill]] %s2030_s0 }
   0x2   :  { %2047 = sst [smem:[#allocation18_spill]] %s2032_s2 }
   0x3   :  { %2048 = sst [smem:[#allocation19_spill]] %s2033_s3 }
   0x4   :  { %8 = vsyncpa [#allocation4], 0 }
   0x5   :  { %10 = vsyncpa [#allocation4 + $0x1], 0 }
   0x6   :  { %11 = vsyncpa [#allocation7], 0 }
   0x7   :  { %13 = vsyncpa [#allocation7 + $0x1], 0 }
   0x8   :  { %14 = vsyncpa [#allocation5], 0 }
   0x9   :  { %16 = vsyncpa [#allocation5 + $0x1], 0  ;;  %s1583_s12 = smov 0   ;;  %s1585_s13 = smov 0  }
   0xa   :  { %s1587_s14 = smov 0   ;;  %s1589_s15 = smov 0  }
   0xb   :  { %s1591_s16 = smov 0   ;;  %s1593_s17 = smov 0  }
   0xc   :  { %s1595_s18 = smov 0   ;;  %s1597_s19 = smov 0  }
   0xd   :  { %s1599_s20 = smov 0   ;;  %s1601_s21 = smov 0  }
   0xe   :  { %s1603_s22 = smov 0   ;;  %s1605_s23 = smov 0  }
   0xf   :  { %s1607_s24 = smov 0   ;;  %s1609_s25 = smov 0  }
  0x10 LB: > { %2049 = sst [smem:[#allocation12_spill]] %s1540_s22  ;;  %s34_s26 = sadd.s32 1, %s1544_s23  ;;  %s1552_s25 = sphi %s1609_s25, %s22_s25   ;;  %s1548_s24 = sphi %s1607_s24, %s2080_s24   ;;  %s1544_s23 = sphi %s1605_s23, %s2079_s23   ;;  %s1540_s22 = sphi %s1603_s22, %s2078_s22   ;;  %s1536_s21 = sphi %s1601_s21, %s2077_s21   ;;  %s1532_s20 = sphi %s1599_s20, %s2089_s20   ;;  %s1528_s19 = sphi %s1597_s19, %s2088_s19   ;;  %s1524_s18 = sphi %s1595_s18, %s2087_s18   ;;  %s1520_s17 = sphi %s1593_s17, %s2086_s17   ;;  %s1516_s16 = sphi %s1591_s16, %s2085_s16   ;;  %s1512_s15 = sphi %s1589_s15, %s2084_s15   ;;  %s1508_s14 = sphi %s1587_s14, %s2083_s14   ;;  %s1504_s13 = sphi %s1585_s13, %s2082_s13   ;;  %s1500_s12 = sphi %s1583_s12, %s2081_s12  }
  0x11   : > { %2050 = sst [smem:[#allocation13_spill]] %s1544_s23  ;;  %s41_s27 = sadd.s32 1, %s1548_s24 }
  0x12   : > { %2051 = sst [smem:[#allocation14_spill]] %s1548_s24  ;;  %p35_p0 = scmp.ge.s32.totalorder %s34_s26, 3 }
  0x13   : > { %s50_s28 = sadd.s32 1, %s1532_s20  ;;  %p57_p1 = scmp.ne.s32.totalorder %s1532_s20, %s1528_s19 }
  0x14   : > { %p2038_p2 = scmp.eq.s32.totalorder %s1552_s25, 0  ;;  %s2091_s26 = smov (%p35_p0, %s34_s26), 0 }
  0x15   : > { %2052 = sst [smem:[#allocation15_spill]] %s2091_s26  ;;  %s2093_s27 = smov (!%p35_p0, %s41_s27), %s1548_s24 }
  0x16   : > { %s1664_s29 = ssub.s32 %s1544_s23, %s2091_s26  ;;  %p1668_p3 = por %p2038_p2, %p57_p1 }
  0x17   : > { %p43_p4 = scmp.ge.s32.totalorder %s2093_s27, 2  ;;  %s132_s4 = sadd.s32 1, %s1508_s14 }
  0x18   : > { %p2037_p7 = scmp.lt.s32.totalorder %s1552_s25, 6  ;;  %s175_s6 = sand.u32 1, %s1532_s20  }
  0x19   : > { %s2095_s27 = smov (%p43_p4, %s2093_s27), 0  ;;  %s1047_s10 = sshll.u32 %s175_s6, 7 }
  0x1a   : > { %2054 = sst [smem:[#allocation16_spill]] %s2095_s27  ;;  %s45_s5 = ssub.s32 %s1548_s24, %s2095_s27 }
  0x1b   : > { %s47_s7 = sor.u32 %s1664_s29, %s45_s5  ;;  %p130_p8 = scmp.eq.s32.totalorder %s45_s5, 0 }
  0x1c   : > { %p48_p9 = scmp.eq.s32.totalorder %s47_s7, 0  ;;  %s1180_s11 = smul.u32 96, %s1548_s24 }
  0x1d   : > { %s1684_s8 = scalar_select %p130_p8, %s1508_s14, %s132_s4  }
  0x1e   : > { %s1687_s9 = scalar_select %p48_p9, %s1532_s20, %s50_s28  }
  0x1f   : > { %p1694_p10 = pnand %p2037_p7, %p1668_p3  ;;  %s185_s27 = sadd.s32 %s1544_s23, %s1180_s11 }
  0x20   : > { %s179_s3 = scalar_lea.vmem [#allocation3], %s1047_s10  ;;  %s1050_s2 = sshll.u32 %s185_s27, 6 }
  0x21   : > { %s188_s22 = sshll.u32 %s179_s3, 4  ;;  %s2056_s0 = sld [smem:[#allocation17_spill]]  ;;  %s1699_s22 = int_to_ptr.vmem [resolvable:$true] %s188_s22 }
  0x22   : > { %p1054_p11 = scmp.ge.s32.totalorder %s1552_s25, 1  ;;  %s1707_s30 = scalar_lea.sflag [#allocation4], %s175_s6 }
  0x23   : > { %p1344_p13 = pneg %p1694_p10 }
  0x27   : > { %s1704_s28 = scalar_lea.hbm %s2056_s0, %s1050_s2  ;;  %s1347_s2 = scalar_lea.hbm %s2056_s0, 12288 }
  0x28   : > { %s1342_s7 = scalar_lea.hbm %s1704_s28, 2048  ;;  %p1348_p3 = scmp.lt.u32.totalorder %s1704_s28, %s2056_s0 }
  0x29   : > { %p1343_p12 = scmp.ne.s32.totalorder %s1704_s28, %s1342_s7  ;;  %p1349_p4 = scmp.lt.u32.totalorder %s1347_s2, %s1342_s7 }
  0x2a   : > { %p1351_p9 = scmp.lt.u32.totalorder %s1342_s7, %s1704_s28 }
  0x2b   : > { %p1345_p0 = pnand %p1344_p13, %p1343_p12  ;;  %p1350_p8 = por %p1349_p4, %p1348_p3 }
  0x2d   : > { %p1346_p1 = pneg %p1345_p0  ;;  %p1352_p7 = por %p1351_p9, %p1350_p8 }
  0x2f   : > { %p1353_p2 = pnand %p1352_p7, %p1346_p1 }
  0x31   : > { %1356 = shalt.err (!%p1353_p2)
}
  0x32   : > { %s1357_s6 = scalar_lea.vmem %s1699_s22, 2048  ;;  %s1554_s4 = smov [#allocation3]  }
  0x33   : > { %p1358_p12 = scmp.ne.s32.totalorder %s1699_s22, %s1357_s6  ;;  %s1362_s5 = sshll.u32 %s1554_s4, 4  ;;  %s1363_s5 = int_to_ptr.vmem [resolvable:$false] %s1362_s5 }
  0x34   : > { %s1364_s3 = scalar_lea.vmem %s1363_s5, 4096  ;;  %p1365_p6 = scmp.lt.s32.totalorder %s1699_s22, %s1363_s5 }
  0x35   : > { %p1360_p0 = pnand %p1358_p12, %p1344_p13  ;;  %p1366_p3 = scmp.lt.s32.totalorder %s1364_s3, %s1357_s6 }
  0x37   : > { %p1361_p5 = pneg %p1360_p0  ;;  %p1367_p4 = por %p1366_p3, %p1365_p6 }
  0x39   : > { %p1368_p8 = pnand %p1367_p4, %p1361_p5 }
  0x3b   : > { %1371 = shalt.err (!%p1368_p8)
}
  0x3c   : > { %s1555_s7 = smov 192   ;;  %s2039_s27 = smov 64  }
  0x3d   : > { %s2040_s2 = smov 4   ;;  %p218_p2 = scmp.lt.s32.totalorder %s1552_s25, 7 }
  0x3e   : > { %1190 = dma.hbm_to_vmem [thread:$0]  (!%p1694_p10), %s1704_s28, 2048, %s1699_s22, %s1707_s30, %s1555_s7, %s2039_s27, %s2040_s2  }
  0x3f   : > { %p1740_p5 = pnand %p1054_p11, %p218_p2  ;;  %s1042_s11 = sadd.s32 4294967295, %s1552_s25  }
  0x40   : > { %s1043_s6 = sadd.s32 4294967294, %s1552_s25   ;;  %p64_p6 = scmp.eq.s32.totalorder %s1042_s11, 0 }
  0x41   : > { %s78_s4 = sadd.s32 1, %s1520_s17  ;;  %p2058_p7 = scmp.eq.s32.totalorder %s1664_s29, 0 }
  0x42   : > { %p2059_p13 = scmp.ne.s32.totalorder %s1528_s19, %s1524_s18  ;;  %p85_p10 = scmp.ne.s32.totalorder %s1520_s17, %s1516_s16 }
  0x43   : > { %s1750_s5 = scalar_select %p2058_p7, %s1520_s17, %s78_s4  }
  0x44   : > { %p1755_p1 = por %p64_p6, %p2059_p13  ;;  %p91_p11 = scmp.ne.s32.totalorder %s1516_s16, %s1512_s15 }
  0x45   : > { %p142_p9 = scmp.ne.s32.totalorder %s1508_s14, %s1504_s13  ;;  %p2061_p12 = scmp.eq.s32.totalorder %s1552_s25, 0 }
  0x46   : > { %s2060_s26 = scalar_select %p1755_p1, 1, 0 }
  0x47   : > { %p87_p0 = por %p85_p10, %p2061_p12  ;;  %p143_p3 = scmp.eq.s32.totalorder %s1042_s11, 5 }
  0x48   : > { %p1767_p4 = por %p91_p11, %p64_p6  ;;  %p148_p8 = scmp.ne.s32.totalorder %s1504_s13, %s1500_s12 }
  0x49   : > { %p1773_p2 = por %p143_p3, %p142_p9  ;;  %p149_p7 = scmp.eq.s32.totalorder %s1043_s6, 5 }
  0x4a   : > { %s2062_s22 = scalar_select %p1767_p4, 1, 0 }
  0x4b   : > { %s2063_s29 = scalar_select %p1773_p2, 1, 0 }
  0x4c   : > { %s198_s18 = sand.u32 1, %s1520_s17   ;;  %s1090_s28 = sshll.u32 %s1544_s23, 10 }
  0x4d   : > { %p1779_p13 = por %p149_p7, %p148_p8  ;;  %s1051_s15 = sshll.u32 %s198_s18, 6 }
  0x4e   : > { %s1786_s11 = scalar_lea.hbm %s2031_s1, %s1090_s28  ;;  %p2065_p6 = scmp.lt.s32.totalorder %s1552_s25, 6 }
  0x4f   : > { %s2064_s30 = scalar_select %p1779_p13, 1, 0 }
  0x50   : > { %p1790_p10 = pnand %p2065_p6, %p87_p0  ;;  %s202_s6 = scalar_lea.vmem [#allocation6], %s1051_s15 }
  0x51   : > { %s210_s27 = sshll.u32 %s202_s6, 4  ;;  %s1796_s2 = scalar_lea.sflag [#allocation7], %s198_s18  ;;  %s1794_s27 = int_to_ptr.vmem [resolvable:$true] %s210_s27 }
  0x52   : > { %s1372_s3 = scalar_lea.hbm %s1786_s11, 1024  ;;  %p1374_p9 = pneg %p1790_p10 }
  0x53   : > { %p1373_p11 = scmp.ne.s32.totalorder %s1786_s11, %s1372_s3  ;;  %s1377_s0 = scalar_lea.hbm %s2031_s1, 3072 }
  0x54   : > { %p1378_p0 = scmp.lt.u32.totalorder %s1786_s11, %s2031_s1  ;;  %p1379_p8 = scmp.lt.u32.totalorder %s1377_s0, %s1372_s3 }
  0x55   : > { %p1375_p12 = pnand %p1374_p9, %p1373_p11  ;;  %p1381_p6 = scmp.lt.u32.totalorder %s1372_s3, %s1786_s11 }
  0x56   : > { %p1380_p7 = por %p1379_p8, %p1378_p0 }
  0x57   : > { %p1376_p3 = pneg %p1375_p12 }
  0x58   : > { %p1382_p13 = por %p1381_p6, %p1380_p7 }
  0x5a   : > { %p1383_p2 = pnand %p1382_p13, %p1376_p3 }
  0x5c   : > { %1386 = shalt.err (!%p1383_p2)
}
  0x5d   : > { %s1387_s18 = scalar_lea.vmem %s1794_s27, 1024  ;;  %s1558_s15 = smov [#allocation6]  }
  0x5e   : > { %p1388_p11 = scmp.ne.s32.totalorder %s1794_s27, %s1387_s18  ;;  %s1392_s6 = sshll.u32 %s1558_s15, 4  ;;  %s1393_s6 = int_to_ptr.vmem [resolvable:$false] %s1392_s6 }
  0x5f   : > { %s1394_s23 = scalar_lea.vmem %s1393_s6, 2048  ;;  %p1395_p1 = scmp.lt.s32.totalorder %s1794_s27, %s1393_s6 }
  0x60   : > { %p1390_p12 = pnand %p1388_p11, %p1374_p9  ;;  %p1396_p0 = scmp.lt.s32.totalorder %s1394_s23, %s1387_s18 }
  0x62   : > { %p1391_p4 = pneg %p1390_p12  ;;  %p1397_p8 = por %p1396_p0, %p1395_p1 }
  0x64   : > { %p1398_p7 = pnand %p1397_p8, %p1391_p4 }
  0x66   : > { %1401 = shalt.err (!%p1398_p7)
}
  0x67   : > { %s2067_s0 = smov 4   ;;  %s2068_s24 = smov 64  }
  0x68   : > { %1193 = dma.hbm_to_vmem [thread:$0]  (!%p1790_p10), %s1786_s11, 1024, %s1794_s27, %s1796_s2, %s2068_s24, %s2068_s24, %s2067_s0  }
  0x69   : > { %222 = sbr.rel (%p1740_p5) target bundleno = 451 (0x1c3), region = 32  ;;  %s224_s3 = sand.u32 (!%p1740_p5), 1, %s1528_s19  }
  0x6a   : > { %s1055_s28 = sshll.u32 (!%p1740_p5), %s224_s3, 7  ;;  %s225_s7 = scalar_lea.sflag (!%p1740_p5), [#allocation4], %s224_s3 }
  0x6b   : > { %s1830_s18 = scalar_lea.vmem (!%p1740_p5), [#allocation3], %s1055_s28  ;;  %p2069_p1 = scmp.ne.s32.totalorder (!%p1740_p5), %s2060_s26, 0 }
  0x70   : > { %1487 = dma.done.wait (%p2069_p1), %s225_s7, 2048  }
  0x71   : > { %1489 = vsyncadd (%p2069_p1), %s225_s7, 4294965248  ;;  %s233_s4 = sand.u32 1, %s1516_s16   ;;  %p2070_p5 = scmp.ne.s32.totalorder %s2062_s22, 0 }
  0x72   : > { %s1056_s15 = sshll.u32 %s233_s4, 6  ;;  %s234_s27 = scalar_lea.sflag [#allocation7], %s233_s4 }
  0x73   : > { %s1837_s2 = scalar_lea.vmem [#allocation6], %s1056_s15 }
  0x74   : > { %1491 = dma.done.wait (%p2070_p5), %s234_s27, 1024  }
  0x75   : > { %1493 = vsyncadd (%p2070_p5), %s234_s27, 4294966272  ;;  %s265_s10 = sand.u32 1, %s1504_s13   ;;  %p1058_p4 = scmp.ne.s32.totalorder %s1536_s21, 0 }
  0x76   : > { %s1057_s11 = sshll.u32 %s265_s10, 8  ;;  %v1559_v0 = vmov (!%p1058_p4), 0.0  }
  0x77   : > { %s1846_s6 = scalar_lea.vmem [#allocation8], %s1057_s11  ;;  %278 = sbr.rel (%p1058_p4) target bundleno = 135 (0x87), region = 44  ;;  %279 = vst [vmem:[#allocation2] sm:$0xff] (!%p1058_p4), %v1559_v0  ;;  %280 = vst [vmem:[#allocation2 + $0x8] sm:$0xff] (!%p1058_p4), %v1559_v0 }
  0x78   : > { %281 = vst [vmem:[#allocation2 + $0x10] sm:$0xff] (!%p1058_p4), %v1559_v0  ;;  %282 = vst [vmem:[#allocation2 + $0x18] sm:$0xff] (!%p1058_p4), %v1559_v0 }
  0x79   : > { %283 = vst [vmem:[#allocation2 + $0x20] sm:$0xff] (!%p1058_p4), %v1559_v0  ;;  %284 = vst [vmem:[#allocation2 + $0x28] sm:$0xff] (!%p1058_p4), %v1559_v0 }
  0x7a   : > { %285 = vst [vmem:[#allocation2 + $0x30] sm:$0xff] (!%p1058_p4), %v1559_v0  ;;  %286 = vst [vmem:[#allocation2 + $0x38] sm:$0xff] (!%p1058_p4), %v1559_v0 }
  0x7b   : > { %287 = vst [vmem:[#allocation2 + $0x40] sm:$0xff] (!%p1058_p4), %v1559_v0  ;;  %288 = vst [vmem:[#allocation2 + $0x48] sm:$0xff] (!%p1058_p4), %v1559_v0 }
  0x7c   : > { %289 = vst [vmem:[#allocation2 + $0x50] sm:$0xff] (!%p1058_p4), %v1559_v0  ;;  %290 = vst [vmem:[#allocation2 + $0x58] sm:$0xff] (!%p1058_p4), %v1559_v0 }
  0x7d   : > { %291 = vst [vmem:[#allocation2 + $0x60] sm:$0xff] (!%p1058_p4), %v1559_v0  ;;  %292 = vst [vmem:[#allocation2 + $0x68] sm:$0xff] (!%p1058_p4), %v1559_v0 }
  0x7e   : > { %293 = vst [vmem:[#allocation2 + $0x70] sm:$0xff] %v1559_v0  ;;  %294 = vst [vmem:[#allocation2 + $0x78] sm:$0xff] %v1559_v0 }
  0x7f   : > { %295 = vst [vmem:[#allocation2 + $0x80] sm:$0xff] %v1559_v0  ;;  %296 = vst [vmem:[#allocation2 + $0x88] sm:$0xff] %v1559_v0 }
  0x80   : > { %297 = vst [vmem:[#allocation2 + $0x90] sm:$0xff] %v1559_v0  ;;  %298 = vst [vmem:[#allocation2 + $0x98] sm:$0xff] %v1559_v0 }
  0x81   : > { %299 = vst [vmem:[#allocation2 + $0xa0] sm:$0xff] %v1559_v0  ;;  %300 = vst [vmem:[#allocation2 + $0xa8] sm:$0xff] %v1559_v0 }
  0x82   : > { %301 = vst [vmem:[#allocation2 + $0xb0] sm:$0xff] %v1559_v0  ;;  %302 = vst [vmem:[#allocation2 + $0xb8] sm:$0xff] %v1559_v0 }
  0x83   : > { %303 = vst [vmem:[#allocation2 + $0xc0] sm:$0xff] %v1559_v0  ;;  %304 = vst [vmem:[#allocation2 + $0xc8] sm:$0xff] %v1559_v0 }
  0x84   : > { %305 = vst [vmem:[#allocation2 + $0xd0] sm:$0xff] %v1559_v0  ;;  %306 = vst [vmem:[#allocation2 + $0xd8] sm:$0xff] %v1559_v0 }
  0x85   : > { %307 = vst [vmem:[#allocation2 + $0xe0] sm:$0xff] %v1559_v0  ;;  %308 = vst [vmem:[#allocation2 + $0xe8] sm:$0xff] %v1559_v0 }
  0x86   : > { %309 = vst [vmem:[#allocation2 + $0xf0] sm:$0xff] %v1559_v0  ;;  %310 = vst [vmem:[#allocation2 + $0xf8] sm:$0xff] %v1559_v0 }
  0x87 PF: > { %v1318_v1 = vld [vmem:[%s1837_s2] sm:$0xff]   ;;  %v1319_v2 = vld [vmem:[%s1837_s2 + $0x8] sm:$0xff]   ;;  %v1320_v3 = vld [vmem:[%s1837_s2 + $0x10] sm:$0xff]   ;;  %p1083_p2 = scmp.ne.s32.totalorder %s1536_s21, 2 }
  0x88   : > { %1116 = vmatprep.subr.bf16.mxu0 %v1318_v1  ;;  %1164 = vmatprep.subr.bf16.mxu1 %v1318_v1  ;;  %v1321_v4 = vld [vmem:[%s1837_s2 + $0x18] sm:$0xff]   ;;  %v1326_v5 = vld [vmem:[%s1830_s18] sm:$0xff]   ;;  %v1323_v8 = vld [vmem:[%s1837_s2 + $0x28] sm:$0xff]   ;;  %s2071_s23 = sld [smem:[#allocation18_spill]] (!%p1083_p2) }
  0x89   : > { %1117 = vmatpush3.bf16.msra.mxu0 %v1318_v1  ;;  %1172 = vmatpush3.bf16.msra.mxu1 %v1318_v1  ;;  %v1327_v6 = vld [vmem:[%s1830_s18 + $0x40] sm:$0xff]   ;;  %v1324_v9 = vld [vmem:[%s1837_s2 + $0x30] sm:$0xff]   ;;  %v1325_v10 = vld [vmem:[%s1837_s2 + $0x38] sm:$0xff]  }
  0x8a   : > { %1118 = vmatprep.subr.bf16.mxu0 %v1319_v2  ;;  %1165 = vmatprep.subr.bf16.mxu1 %v1319_v2  ;;  %v1322_v7 = vld [vmem:[%s1837_s2 + $0x20] sm:$0xff]   ;;  %v1328_v11 = vld [vmem:[%s1830_s18 + $0x8] sm:$0xff]   ;;  %v1330_v13 = vld [vmem:[%s1830_s18 + $0x10] sm:$0xff]  }
  0x8b   : > { %1132 = vmatprep.mubr.bf16.mxu0 %v1326_v5  ;;  %1148 = vmatprep.mubr.bf16.mxu1 %v1327_v6  ;;  %v1329_v12 = vld [vmem:[%s1830_s18 + $0x48] sm:$0xff]   ;;  %v1331_v14 = vld [vmem:[%s1830_s18 + $0x50] sm:$0xff]   ;;  %v1332_v15 = vld [vmem:[%s1830_s18 + $0x18] sm:$0xff]  }
  0x8c   : > { %v1333_v16 = vld [vmem:[%s1830_s18 + $0x58] sm:$0xff]   ;;  %v1334_v17 = vld [vmem:[%s1830_s18 + $0x20] sm:$0xff]   ;;  %v1336_v19 = vld [vmem:[%s1830_s18 + $0x28] sm:$0xff]  }
  0x8d   : > { %1119 = vmatpush3.bf16.msra.mxu0 %v1319_v2  ;;  %1173 = vmatpush3.bf16.msra.mxu1 %v1319_v2  ;;  %v1335_v18 = vld [vmem:[%s1830_s18 + $0x60] sm:$0xff]   ;;  %v1337_v20 = vld [vmem:[%s1830_s18 + $0x68] sm:$0xff]   ;;  %v1338_v21 = vld [vmem:[%s1830_s18 + $0x30] sm:$0xff]  }
  0x8e   : > { %1120 = vmatprep.subr.bf16.mxu0 %v1320_v3  ;;  %1166 = vmatprep.subr.bf16.mxu1 %v1320_v3  ;;  %v1339_v22 = vld [vmem:[%s1830_s18 + $0x70] sm:$0xff]   ;;  %v1340_v23 = vld [vmem:[%s1830_s18 + $0x38] sm:$0xff]   ;;  %v311_v27 = vld [vmem:[#allocation2] sm:$0xff] }
  0x8f   : > { %v1341_v24 = vld [vmem:[%s1830_s18 + $0x78] sm:$0xff]   ;;  %v313_v25 = vld [vmem:[#allocation2 + $0x10] sm:$0xff]  ;;  %v327_v28 = vld [vmem:[#allocation2 + $0x80] sm:$0xff] }
  0x90   : > { %v329_v26 = vld [vmem:[#allocation2 + $0x90] sm:$0xff]  ;;  %v314_v31 = vld [vmem:[#allocation2 + $0x18] sm:$0xff]  ;;  %v312_v37 = vld [vmem:[#allocation2 + $0x8] sm:$0xff] }
  0x91   : > { %1121 = vmatpush3.bf16.msra.mxu0 %v1320_v3  ;;  %1174 = vmatpush3.bf16.msra.mxu1 %v1320_v3  ;;  %v330_v32 = vld [vmem:[#allocation2 + $0x98] sm:$0xff]  ;;  %v328_v38 = vld [vmem:[#allocation2 + $0x88] sm:$0xff]  ;;  %v317_v49 = vld [vmem:[#allocation2 + $0x30] sm:$0xff] }
  0x92   : > { %1122 = vmatprep.subr.bf16.mxu0 %v1321_v4  ;;  %1167 = vmatprep.subr.bf16.mxu1 %v1321_v4  ;;  %v333_v50 = vld [vmem:[#allocation2 + $0xb0] sm:$0xff]  ;;  %v315_v51 = vld [vmem:[#allocation2 + $0x20] sm:$0xff]  ;;  %v318_v55 = vld [vmem:[#allocation2 + $0x38] sm:$0xff] }
  0x93   : > { %v331_v52 = vld [vmem:[#allocation2 + $0xa0] sm:$0xff]  ;;  %v334_v56 = vld [vmem:[#allocation2 + $0xb8] sm:$0xff]  ;;  %v316_v61 = vld [vmem:[#allocation2 + $0x28] sm:$0xff] }
  0x94   : > { %v332_v62 = vld [vmem:[#allocation2 + $0xa8] sm:$0xff] }
  0x95   : > { %1123 = vmatpush3.bf16.msra.mxu0 %v1321_v4  ;;  %1175 = vmatpush3.bf16.msra.mxu1 %v1321_v4 }
  0x96   : > { %1124 = vmatprep.subr.bf16.mxu0 %v1322_v7  ;;  %1168 = vmatprep.subr.bf16.mxu1 %v1322_v7 }
  0x99   : > { %1125 = vmatpush3.bf16.msra.mxu0 %v1322_v7  ;;  %1176 = vmatpush3.bf16.msra.mxu1 %v1322_v7 }
  0x9a   : > { %1126 = vmatprep.subr.bf16.mxu0 %v1323_v8  ;;  %1169 = vmatprep.subr.bf16.mxu1 %v1323_v8 }
  0x9d   : > { %1127 = vmatpush3.bf16.msra.mxu0 %v1323_v8  ;;  %1177 = vmatpush3.bf16.msra.mxu1 %v1323_v8 }
  0x9e   : > { %1128 = vmatprep.subr.bf16.mxu0 %v1324_v9  ;;  %1170 = vmatprep.subr.bf16.mxu1 %v1324_v9 }
  0xa1   : > { %1129 = vmatpush3.bf16.msra.mxu0 %v1324_v9  ;;  %1178 = vmatpush3.bf16.msra.mxu1 %v1324_v9  ;;  %v321_v9 = vld [vmem:[#allocation2 + $0x50] sm:$0xff] }
  0xa2   : > { %1130 = vmatprep.subr.bf16.mxu0 %v1325_v10  ;;  %1171 = vmatprep.subr.bf16.mxu1 %v1325_v10 }
  0xa5   : > { %1131 = vmatpush3.bf16.msra.mxu0 %v1325_v10  ;;  %1179 = vmatpush3.bf16.msra.mxu1 %v1325_v10  ;;  %v337_v10 = vld [vmem:[#allocation2 + $0xd0] sm:$0xff] }
  0xa8   : > { %1133 = vmatmul.mubr.bf16.vlgmr.msra.gmra.mrb[0].mxu0 %v1328_v11  ;;  %1149 = vmatmul.mubr.bf16.vlgmr.msra.gmra.mrb[0].mxu1 %v1329_v12  ;;  %v319_v11 = vld [vmem:[#allocation2 + $0x40] sm:$0xff] }
  0xa9   : > { %1136 = vmatprep.mubr.bf16.mxu0 %v1330_v13  ;;  %1152 = vmatprep.mubr.bf16.mxu1 %v1331_v14  ;;  %v335_v12 = vld [vmem:[#allocation2 + $0xc0] sm:$0xff] }
  0xb0   : > { %1137 = vmatmul.mubr.bf16.gmra.mrb[4].mxu0 %v1332_v15  ;;  %1153 = vmatmul.mubr.bf16.gmra.mrb[4].mxu1 %v1333_v16  ;;  %v322_v15 = vld [vmem:[#allocation2 + $0x58] sm:$0xff] }
  0xb1   : > { %1140 = vmatprep.mubr.bf16.mxu0 %v1334_v17  ;;  %1156 = vmatprep.mubr.bf16.mxu1 %v1335_v18  ;;  %v338_v16 = vld [vmem:[#allocation2 + $0xd8] sm:$0xff] }
  0xb8   : > { %1141 = vmatmul.mubr.bf16.gmra.mrb[8].mxu0 %v1336_v19  ;;  %1157 = vmatmul.mubr.bf16.gmra.mrb[8].mxu1 %v1337_v20 }
  0xb9   : > { %1144 = vmatprep.mubr.bf16.mxu0 %v1338_v21  ;;  %1160 = vmatprep.mubr.bf16.mxu1 %v1339_v22  ;;  %v320_v21 = vld [vmem:[#allocation2 + $0x48] sm:$0xff] }
  0xba   : > { %v336_v22 = vld [vmem:[#allocation2 + $0xc8] sm:$0xff] }
  0xc0   : > { %1145 = vmatmul.mubr.bf16.gmra.mrb[12].mxu0 %v1340_v23  ;;  %1161 = vmatmul.mubr.bf16.gmra.mrb[12].mxu1 %v1341_v24 }
 0x17b   : > { %v1134_v29 = vpop.f32.mrb[0].mxu0  ;;  %v1150_v30 = vpop.f32.mrb[0].mxu1 }
 0x17c   : > { %v698_v33 = vadd.f32 %v1134_v29, %v313_v25  ;;  %v714_v34 = vadd.f32 %v1150_v30, %v329_v26  ;;  %v569_v35 = vpop.f32.mrb[1].mxu0  ;;  %v633_v36 = vpop.f32.mrb[1].mxu1 }
 0x17d   : > { %v696_v39 = vadd.f32 %v569_v35, %v311_v27  ;;  %v712_v40 = vadd.f32 %v633_v36, %v327_v28  ;;  %v1135_v41 = vpop.f32.mrb[2].mxu0  ;;  %v1151_v42 = vpop.f32.mrb[2].mxu1  ;;  %v323_v35 = vld [vmem:[#allocation2 + $0x60] sm:$0xff] }
 0x17e   : > { %730 = vst [vmem:[#allocation2 + $0x10] sm:$0xff] %v698_v33  ;;  %746 = vst [vmem:[#allocation2 + $0x90] sm:$0xff] %v714_v34  ;;  %v699_v43 = vadd.f32 %v1135_v41, %v314_v31  ;;  %v715_v44 = vadd.f32 %v1151_v42, %v330_v32  ;;  %v572_v45 = vpop.f32.mrb[3].mxu0  ;;  %v636_v46 = vpop.f32.mrb[3].mxu1  ;;  %v325_v33 = vld [vmem:[#allocation2 + $0x70] sm:$0xff]  ;;  %v339_v36 = vld [vmem:[#allocation2 + $0xe0] sm:$0xff] }
 0x17f   : > { %728 = vst [vmem:[#allocation2] sm:$0xff] %v696_v39  ;;  %744 = vst [vmem:[#allocation2 + $0x80] sm:$0xff] %v712_v40  ;;  %v697_v47 = vadd.f32 %v572_v45, %v312_v37  ;;  %v713_v48 = vadd.f32 %v636_v46, %v328_v38  ;;  %v341_v34 = vld [vmem:[#allocation2 + $0xf0] sm:$0xff]  ;;  %v326_v39 = vld [vmem:[#allocation2 + $0x78] sm:$0xff] }
 0x180   : > { %731 = vst [vmem:[#allocation2 + $0x18] sm:$0xff] %v699_v43  ;;  %747 = vst [vmem:[#allocation2 + $0x98] sm:$0xff] %v715_v44  ;;  %v342_v40 = vld [vmem:[#allocation2 + $0xf8] sm:$0xff]  ;;  %v324_v45 = vld [vmem:[#allocation2 + $0x68] sm:$0xff] }
 0x181   : > { %729 = vst [vmem:[#allocation2 + $0x8] sm:$0xff] %v697_v47  ;;  %745 = vst [vmem:[#allocation2 + $0x88] sm:$0xff] %v713_v48  ;;  %v340_v46 = vld [vmem:[#allocation2 + $0xe8] sm:$0xff] }
 0x183   : > { %v1138_v53 = vpop.f32.mrb[4].mxu0  ;;  %v1154_v54 = vpop.f32.mrb[4].mxu1 }
 0x184   : > { %v702_v57 = vadd.f32 %v1138_v53, %v317_v49  ;;  %v718_v58 = vadd.f32 %v1154_v54, %v333_v50  ;;  %v585_v59 = vpop.f32.mrb[5].mxu0  ;;  %v649_v60 = vpop.f32.mrb[5].mxu1 }
 0x185   : > { %v700_v63 = vadd.f32 %v585_v59, %v315_v51  ;;  %v716_v0 = vadd.f32 %v649_v60, %v331_v52  ;;  %v1139_v1 = vpop.f32.mrb[6].mxu0  ;;  %v1155_v2 = vpop.f32.mrb[6].mxu1 }
 0x186   : > { %734 = vst [vmem:[#allocation2 + $0x30] sm:$0xff] %v702_v57  ;;  %750 = vst [vmem:[#allocation2 + $0xb0] sm:$0xff] %v718_v58  ;;  %v703_v3 = vadd.f32 %v1139_v1, %v318_v55  ;;  %v719_v4 = vadd.f32 %v1155_v2, %v334_v56  ;;  %v588_v5 = vpop.f32.mrb[7].mxu0  ;;  %v652_v6 = vpop.f32.mrb[7].mxu1  ;;  %v764_v57 = vld [vmem:[#allocation2] sm:$0xff] (!%p1083_p2) }
 0x187   : > { %732 = vst [vmem:[#allocation2 + $0x20] sm:$0xff] %v700_v63  ;;  %748 = vst [vmem:[#allocation2 + $0xa0] sm:$0xff] %v716_v0  ;;  %v701_v7 = vadd.f32 %v588_v5, %v316_v61  ;;  %v717_v8 = vadd.f32 %v652_v6, %v332_v62  ;;  %v1877_v58 = vld [vmem:[%s2071_s23] ss:$0 sm:$0xff] (!%p1083_p2)  ;;  %v766_v62 = vld [vmem:[#allocation2 + $0x10] sm:$0xff] (!%p1083_p2) }
 0x188   : > { %735 = vst [vmem:[#allocation2 + $0x38] sm:$0xff] %v703_v3  ;;  %751 = vst [vmem:[#allocation2 + $0xb8] sm:$0xff] %v719_v4  ;;  %v765_v59 = vld [vmem:[#allocation2 + $0x8] sm:$0xff] (!%p1083_p2)  ;;  %v803_v60 = vadd.f32 (!%p1083_p2), %v1877_v58, %v764_v57  ;;  %v767_v63 = vld [vmem:[#allocation2 + $0x18] sm:$0xff] (!%p1083_p2)  ;;  %v805_v1 = vadd.f32 (!%p1083_p2), %v1877_v58, %v766_v62 }
 0x189   : > { %733 = vst [vmem:[#allocation2 + $0x28] sm:$0xff] %v701_v7  ;;  %749 = vst [vmem:[#allocation2 + $0xa8] sm:$0xff] %v717_v8  ;;  %v804_v61 = vadd.f32 (!%p1083_p2), %v1877_v58, %v765_v59  ;;  %v806_v2 = vadd.f32 (!%p1083_p2), %v1877_v58, %v767_v63 }
 0x18a   : > { %v835_v7 = vmax.f32 (!%p1083_p2), %v803_v60, 0.0 }
 0x18b   : > { %v1142_v13 = vpop.f32.mrb[8].mxu0  ;;  %v1158_v14 = vpop.f32.mrb[8].mxu1  ;;  %v836_v8 = vmax.f32 (!%p1083_p2), %v804_v61, 0.0 }
 0x18c   : > { %v706_v17 = vadd.f32 %v1142_v13, %v321_v9  ;;  %v722_v18 = vadd.f32 %v1158_v14, %v337_v10  ;;  %v601_v19 = vpop.f32.mrb[9].mxu0  ;;  %v665_v20 = vpop.f32.mrb[9].mxu1  ;;  %v837_v14 = vmax.f32 (!%p1083_p2), %v805_v1, 0.0  ;;  %867 = vst [vmem:[%s1846_s6] sm:$0xff] (!%p1083_p2), %v835_v7 }
 0x18d   : > { %v704_v23 = vadd.f32 %v601_v19, %v319_v11  ;;  %v720_v24 = vadd.f32 %v665_v20, %v335_v12  ;;  %v1143_v25 = vpop.f32.mrb[10].mxu0  ;;  %v1159_v26 = vpop.f32.mrb[10].mxu1  ;;  %v770_v5 = vld [vmem:[#allocation2 + $0x30] sm:$0xff] (!%p1083_p2)  ;;  %868 = vst [vmem:[%s1846_s6 + $0x8] sm:$0xff] (!%p1083_p2), %v836_v8 }
 0x18e   : > { %738 = vst [vmem:[#allocation2 + $0x50] sm:$0xff] %v706_v17  ;;  %754 = vst [vmem:[#allocation2 + $0xd0] sm:$0xff] %v722_v18  ;;  %v707_v27 = vadd.f32 %v1143_v25, %v322_v15  ;;  %v723_v28 = vadd.f32 %v1159_v26, %v338_v16  ;;  %v604_v29 = vpop.f32.mrb[11].mxu0  ;;  %v668_v30 = vpop.f32.mrb[11].mxu1  ;;  %v768_v0 = vld [vmem:[#allocation2 + $0x20] sm:$0xff] (!%p1083_p2)  ;;  %v809_v10 = vadd.f32 (!%p1083_p2), %v1877_v58, %v770_v5  ;;  %v838_v15 = vmax.f32 (!%p1083_p2), %v806_v2, 0.0 }
 0x18f   : > { %736 = vst [vmem:[#allocation2 + $0x40] sm:$0xff] %v704_v23  ;;  %752 = vst [vmem:[#allocation2 + $0xc0] sm:$0xff] %v720_v24  ;;  %v705_v31 = vadd.f32 %v604_v29, %v320_v21  ;;  %v721_v32 = vadd.f32 %v668_v30, %v336_v22  ;;  %v807_v3 = vadd.f32 (!%p1083_p2), %v1877_v58, %v768_v0  ;;  %v771_v6 = vld [vmem:[#allocation2 + $0x38] sm:$0xff] (!%p1083_p2) }
 0x190   : > { %739 = vst [vmem:[#allocation2 + $0x58] sm:$0xff] %v707_v27  ;;  %755 = vst [vmem:[#allocation2 + $0xd8] sm:$0xff] %v723_v28  ;;  %v769_v4 = vld [vmem:[#allocation2 + $0x28] sm:$0xff] (!%p1083_p2)  ;;  %v810_v17 = vadd.f32 (!%p1083_p2), %v1877_v58, %v771_v6  ;;  %v841_v22 = vmax.f32 (!%p1083_p2), %v809_v10, 0.0 }
 0x191   : > { %737 = vst [vmem:[#allocation2 + $0x48] sm:$0xff] %v705_v31  ;;  %753 = vst [vmem:[#allocation2 + $0xc8] sm:$0xff] %v721_v32  ;;  %v808_v9 = vadd.f32 (!%p1083_p2), %v1877_v58, %v769_v4  ;;  %v839_v16 = vmax.f32 (!%p1083_p2), %v807_v3, 0.0  ;;  %v780_v31 = vld [vmem:[#allocation2 + $0x80] sm:$0xff] (!%p1083_p2)  ;;  %v781_v32 = vld [vmem:[#allocation2 + $0x88] sm:$0xff] (!%p1083_p2) }
 0x192   : > { %869 = vst [vmem:[%s1846_s6 + $0x10] sm:$0xff] (!%p1083_p2), %v837_v14  ;;  %870 = vst [vmem:[%s1846_s6 + $0x18] sm:$0xff] (!%p1083_p2), %v838_v15  ;;  %v842_v27 = vmax.f32 (!%p1083_p2), %v810_v17, 0.0 }
 0x193   : > { %v1146_v37 = vpop.f32.mrb[12].mxu0  ;;  %v1162_v38 = vpop.f32.mrb[12].mxu1  ;;  %763 = sbr.rel (%p1083_p2) target bundleno = 423 (0x1a7), region = 48  ;;  %v840_v21 = vmax.f32 (!%p1083_p2), %v808_v9, 0.0  ;;  %871 = vst [vmem:[%s1846_s6 + $0x20] sm:$0xff] (!%p1083_p2), %v839_v16  ;;  %873 = vst [vmem:[%s1846_s6 + $0x30] sm:$0xff] (!%p1083_p2), %v841_v22 }
 0x194   : > { %v710_v41 = vadd.f32 %v1146_v37, %v325_v33  ;;  %v726_v42 = vadd.f32 %v1162_v38, %v341_v34  ;;  %v617_v43 = vpop.f32.mrb[13].mxu0  ;;  %v681_v44 = vpop.f32.mrb[13].mxu1  ;;  %v782_v37 = vld [vmem:[#allocation2 + $0x90] sm:$0xff] (!%p1083_p2)  ;;  %v783_v38 = vld [vmem:[#allocation2 + $0x98] sm:$0xff] (!%p1083_p2)  ;;  %874 = vst [vmem:[%s1846_s6 + $0x38] sm:$0xff] (!%p1083_p2), %v842_v27 }
 0x195   : > { %v708_v47 = vadd.f32 %v617_v43, %v323_v35  ;;  %v724_v48 = vadd.f32 %v681_v44, %v339_v36  ;;  %v1147_v49 = vpop.f32.mrb[14].mxu0  ;;  %v1163_v50 = vpop.f32.mrb[14].mxu1  ;;  %v774_v13 = vld [vmem:[#allocation2 + $0x50] sm:$0xff] (!%p1083_p2)  ;;  %872 = vst [vmem:[%s1846_s6 + $0x28] sm:$0xff] (!%p1083_p2), %v840_v21  ;;  %v785_v44 = vld [vmem:[#allocation2 + $0xa8] sm:$0xff] (!%p1083_p2) }
 0x196   : > { %742 = vst [vmem:[#allocation2 + $0x70] sm:$0xff] %v710_v41  ;;  %758 = vst [vmem:[#allocation2 + $0xf0] sm:$0xff] %v726_v42  ;;  %v711_v51 = vadd.f32 %v1147_v49, %v326_v39  ;;  %v727_v52 = vadd.f32 %v1163_v50, %v342_v40  ;;  %v620_v53 = vpop.f32.mrb[15].mxu0  ;;  %v684_v54 = vpop.f32.mrb[15].mxu1  ;;  %v772_v11 = vld [vmem:[#allocation2 + $0x40] sm:$0xff] (!%p1083_p2)  ;;  %v813_v28 = vadd.f32 (!%p1083_p2), %v1877_v58, %v774_v13  ;;  %v787_v50 = vld [vmem:[#allocation2 + $0xb8] sm:$0xff] (!%p1083_p2) }
 0x197   : > { %740 = vst [vmem:[#allocation2 + $0x60] sm:$0xff] %v708_v47  ;;  %756 = vst [vmem:[#allocation2 + $0xe0] sm:$0xff] %v724_v48  ;;  %v709_v55 = vadd.f32 %v620_v53, %v324_v45  ;;  %v725_v56 = vadd.f32 %v684_v54, %v340_v46  ;;  %v775_v18 = vld [vmem:[#allocation2 + $0x58] sm:$0xff] (!%p1083_p2)  ;;  %v811_v23 = vadd.f32 (!%p1083_p2), %v1877_v58, %v772_v11  ;;  %v784_v39 = vld [vmem:[#allocation2 + $0xa0] sm:$0xff] (!%p1083_p2) }
 0x198   : > { %743 = vst [vmem:[#allocation2 + $0x78] sm:$0xff] %v711_v51  ;;  %759 = vst [vmem:[#allocation2 + $0xf8] sm:$0xff] %v727_v52  ;;  %v773_v12 = vld [vmem:[#allocation2 + $0x48] sm:$0xff] (!%p1083_p2)  ;;  %v814_v29 = vadd.f32 (!%p1083_p2), %v1877_v58, %v775_v18  ;;  %v845_v40 = vmax.f32 (!%p1083_p2), %v813_v28, 0.0  ;;  %v786_v45 = vld [vmem:[#allocation2 + $0xb0] sm:$0xff] (!%p1083_p2)  ;;  %v819_v48 = vadd.f32 (!%p1083_p2), %v1877_v58, %v780_v31  ;;  %v820_v49 = vadd.f32 (!%p1083_p2), %v1877_v58, %v781_v32 }
 0x199   : > { %741 = vst [vmem:[#allocation2 + $0x68] sm:$0xff] %v709_v55  ;;  %757 = vst [vmem:[#allocation2 + $0xe8] sm:$0xff] %v725_v56  ;;  %v812_v24 = vadd.f32 (!%p1083_p2), %v1877_v58, %v773_v12  ;;  %v843_v33 = vmax.f32 (!%p1083_p2), %v811_v23, 0.0  ;;  %v821_v52 = vadd.f32 (!%p1083_p2), %v1877_v58, %v782_v37  ;;  %v822_v53 = vadd.f32 (!%p1083_p2), %v1877_v58, %v783_v38  ;;  %v788_v55 = vld [vmem:[#allocation2 + $0xc0] sm:$0xff] (!%p1083_p2)  ;;  %v789_v56 = vld [vmem:[#allocation2 + $0xc8] sm:$0xff] (!%p1083_p2) }
 0x19a   : > { %v846_v41 = vmax.f32 %v814_v29, 0.0  ;;  %877 = vst [vmem:[%s1846_s6 + $0x50] sm:$0xff] %v845_v40  ;;  %v823_v54 = vadd.f32 %v1877_v58, %v784_v39  ;;  %v851_v57 = vmax.f32 %v819_v48, 0.0  ;;  %v852_v59 = vmax.f32 %v820_v49, 0.0  ;;  %v790_v62 = vld [vmem:[#allocation2 + $0xd0] sm:$0xff]  ;;  %v791_v63 = vld [vmem:[#allocation2 + $0xd8] sm:$0xff] }
 0x19b   : > { %v844_v34 = vmax.f32 %v812_v24, 0.0  ;;  %875 = vst [vmem:[%s1846_s6 + $0x40] sm:$0xff] %v843_v33  ;;  %v824_v60 = vadd.f32 %v1877_v58, %v785_v44  ;;  %v825_v61 = vadd.f32 %v1877_v58, %v786_v45  ;;  %v853_v1 = vmax.f32 %v821_v52, 0.0 }
 0x19c   : > { %878 = vst [vmem:[%s1846_s6 + $0x58] sm:$0xff] %v846_v41  ;;  %v854_v2 = vmax.f32 %v822_v53, 0.0  ;;  %v855_v3 = vmax.f32 %v823_v54, 0.0  ;;  %v826_v4 = vadd.f32 %v1877_v58, %v787_v50  ;;  %883 = vst [vmem:[%s1846_s6 + $0x80] sm:$0xff] %v851_v57  ;;  %v827_v9 = vadd.f32 %v1877_v58, %v788_v55 }
 0x19d   : > { %v778_v25 = vld [vmem:[#allocation2 + $0x70] sm:$0xff]  ;;  %876 = vst [vmem:[%s1846_s6 + $0x48] sm:$0xff] %v844_v34  ;;  %884 = vst [vmem:[%s1846_s6 + $0x88] sm:$0xff] %v852_v59  ;;  %v856_v7 = vmax.f32 %v824_v60, 0.0  ;;  %v857_v8 = vmax.f32 %v825_v61, 0.0  ;;  %v828_v10 = vadd.f32 %v1877_v58, %v789_v56  ;;  %v829_v13 = vadd.f32 %v1877_v58, %v790_v62 }
 0x19e   : > { %v776_v19 = vld [vmem:[#allocation2 + $0x60] sm:$0xff]  ;;  %v817_v36 = vadd.f32 %v1877_v58, %v778_v25  ;;  %v794_v6 = vld [vmem:[#allocation2 + $0xf0] sm:$0xff]  ;;  %885 = vst [vmem:[%s1846_s6 + $0x90] sm:$0xff] %v853_v1  ;;  %886 = vst [vmem:[%s1846_s6 + $0x98] sm:$0xff] %v854_v2  ;;  %v858_v12 = vmax.f32 %v826_v4, 0.0  ;;  %v830_v14 = vadd.f32 %v1877_v58, %v791_v63  ;;  %v859_v16 = vmax.f32 %v827_v9, 0.0 }
 0x19f   : > { %v779_v26 = vld [vmem:[#allocation2 + $0x78] sm:$0xff]  ;;  %v815_v30 = vadd.f32 %v1877_v58, %v776_v19  ;;  %v792_v0 = vld [vmem:[#allocation2 + $0xe0] sm:$0xff]  ;;  %887 = vst [vmem:[%s1846_s6 + $0xa0] sm:$0xff] %v855_v3  ;;  %888 = vst [vmem:[%s1846_s6 + $0xa8] sm:$0xff] %v856_v7  ;;  %v860_v17 = vmax.f32 %v828_v10, 0.0  ;;  %v833_v19 = vadd.f32 %v1877_v58, %v794_v6 }
 0x1a0   : > { %v777_v20 = vld [vmem:[#allocation2 + $0x68] sm:$0xff]  ;;  %v818_v43 = vadd.f32 %v1877_v58, %v779_v26  ;;  %v849_v47 = vmax.f32 %v817_v36, 0.0  ;;  %v795_v11 = vld [vmem:[#allocation2 + $0xf8] sm:$0xff]  ;;  %v831_v15 = vadd.f32 %v1877_v58, %v792_v0  ;;  %889 = vst [vmem:[%s1846_s6 + $0xb0] sm:$0xff] %v857_v8  ;;  %890 = vst [vmem:[%s1846_s6 + $0xb8] sm:$0xff] %v858_v12  ;;  %v862_v21 = vmax.f32 %v830_v14, 0.0 }
 0x1a1   : > { %v816_v35 = vadd.f32 %v1877_v58, %v777_v20  ;;  %v847_v42 = vmax.f32 %v815_v30, 0.0  ;;  %v793_v5 = vld [vmem:[#allocation2 + $0xe8] sm:$0xff]  ;;  %v861_v20 = vmax.f32 %v829_v13, 0.0  ;;  %v834_v23 = vadd.f32 %v1877_v58, %v795_v11  ;;  %891 = vst [vmem:[%s1846_s6 + $0xc0] sm:$0xff] %v859_v16  ;;  %892 = vst [vmem:[%s1846_s6 + $0xc8] sm:$0xff] %v860_v17 }
 0x1a2   : > { %v850_v51 = vmax.f32 %v818_v43, 0.0  ;;  %881 = vst [vmem:[%s1846_s6 + $0x70] sm:$0xff] %v849_v47  ;;  %v832_v18 = vadd.f32 %v1877_v58, %v793_v5  ;;  %v863_v22 = vmax.f32 %v831_v15, 0.0  ;;  %v865_v25 = vmax.f32 %v833_v19, 0.0  ;;  %894 = vst [vmem:[%s1846_s6 + $0xd8] sm:$0xff] %v862_v21 }
 0x1a3   : > { %v848_v46 = vmax.f32 %v816_v35, 0.0  ;;  %879 = vst [vmem:[%s1846_s6 + $0x60] sm:$0xff] %v847_v42  ;;  %893 = vst [vmem:[%s1846_s6 + $0xd0] sm:$0xff] %v861_v20  ;;  %v866_v26 = vmax.f32 %v834_v23, 0.0 }
 0x1a4   : > { %882 = vst [vmem:[%s1846_s6 + $0x78] sm:$0xff] %v850_v51  ;;  %v864_v24 = vmax.f32 %v832_v18, 0.0  ;;  %895 = vst [vmem:[%s1846_s6 + $0xe0] sm:$0xff] %v863_v22 }
 0x1a5   : > { %880 = vst [vmem:[%s1846_s6 + $0x68] sm:$0xff] %v848_v46  ;;  %897 = vst [vmem:[%s1846_s6 + $0xf0] sm:$0xff] %v865_v25 }
 0x1a6   : > { %896 = vst [vmem:[%s1846_s6 + $0xe8] sm:$0xff] %v864_v24  ;;  %898 = vst [vmem:[%s1846_s6 + $0xf8] sm:$0xff] %v866_v26 }
 0x1a7 PF: > { %s2072_s21 = sld [smem:[#allocation12_spill]]  ;;  %s2073_s28 = sld [smem:[#allocation19_spill]] }
 0x1a8   : > { %s914_s18 = sshll.u32 %s1846_s6, 4  ;;  %s1954_s4 = scalar_lea.sflag [#allocation5], %s265_s10  ;;  %s1950_s18 = int_to_ptr.vmem [resolvable:$true] %s914_s18 }
 0x1a9   : > { %s1402_s15 = scalar_lea.vmem %s1950_s18, 4096  ;;  %p2074_p10 = scmp.ne.s32.totalorder %s2063_s29, 0 }
 0x1aa   : > { %p1403_p13 = scmp.ne.s32.totalorder %s1950_s18, %s1402_s15  ;;  %s1560_s27 = smov [#allocation8]  }
 0x1ab   : > { %s1406_s2 = sshll.u32 %s1560_s27, 4  ;;  %s1407_s2 = int_to_ptr.vmem [resolvable:$false] %s1406_s2 }
 0x1ac   : > { %p1404_p9 = pnand %p1403_p13, %p2074_p10  ;;  %s1408_s11 = scalar_lea.vmem %s1407_s2, 8192 }
 0x1ad   : > { %s1091_s0 = sshll.u32 %s2072_s21, 12  ;;  %p1409_p6 = scmp.lt.s32.totalorder %s1950_s18, %s1407_s2 }
 0x1ae   : > { %s1947_s7 = scalar_lea.hbm %s2073_s28, %s1091_s0  ;;  %p1405_p3 = pneg %p1404_p9 }
 0x1af   : > { %p1410_p11 = scmp.lt.s32.totalorder %s1408_s11, %s1402_s15 }
 0x1b1   : > { %p1411_p12 = por %p1410_p11, %p1409_p6 }
 0x1b3   : > { %p1412_p0 = pnand %p1411_p12, %p1405_p3 }
 0x1b5   : > { %1415 = shalt.err (!%p1412_p0)
}
 0x1b6   : > { %s1416_s10 = scalar_lea.hbm %s1947_s7, 4096  ;;  %s1420_s22 = scalar_lea.hbm %s2073_s28, 8192 }
 0x1b7   : > { %p1417_p8 = scmp.ne.s32.totalorder %s1947_s7, %s1416_s10  ;;  %p1421_p5 = scmp.lt.u32.totalorder %s1947_s7, %s2073_s28 }
 0x1b8   : > { %p1422_p4 = scmp.lt.u32.totalorder %s1420_s22, %s1416_s10  ;;  %p1424_p13 = scmp.lt.u32.totalorder %s1416_s10, %s1947_s7 }
 0x1b9   : > { %p1418_p7 = pnand %p1417_p8, %p2074_p10 }
 0x1ba   : > { %p1423_p2 = por %p1422_p4, %p1421_p5 }
 0x1bb   : > { %p1419_p1 = pneg %p1418_p7 }
 0x1bc   : > { %p1425_p9 = por %p1424_p13, %p1423_p2 }
 0x1be   : > { %p1426_p3 = pnand %p1425_p9, %p1419_p1 }
 0x1c0   : > { %1429 = shalt.err (!%p1426_p3)
}
 0x1c1   : > { %s1561_s0 = smov 128   ;;  %s1562_s24 = smov 8  }
 0x1c2   : > { %1185 = dma.vmem_to_hbm [thread:$0]  (%p2074_p10), %s1950_s18, 4096, %s1947_s7, %s1954_s4, %s1561_s0, %s1561_s0, %s1562_s24  }
 0x1c3 PF: > { %p1199_p6 = scmp.ge.s32.totalorder %s1552_s25, 2  ;;  %s929_s3 = sand.u32 1, %s1500_s12  }
 0x1c4   : > { %p2075_p11 = scmp.ne.s32.totalorder %s2064_s30, 0  ;;  %s930_s15 = scalar_lea.sflag [#allocation5], %s929_s3 }
 0x1c6   : > { %p1195_p12 = pnand %p1199_p6, %p2075_p11 }
 0x1c8   : > { %1495 = dma.done.wait (!%p1195_p12), %s930_s15, 4096  }
 0x1c9   : > { %1497 = vsyncadd (!%p1195_p12), %s930_s15, 4294963200  ;;  %s22_s25 = sadd.s32 1, %s1552_s25   ;;  %s2077_s21 = sld [smem:[#allocation13_spill]] }
 0x1ca   : > { %p1983_p0 = scmp.ge.s32.totalorder %s22_s25, 8   ;;  %s2078_s22 = sld [smem:[#allocation14_spill]] }
 0x1cb   : > { %s2079_s23 = sld [smem:[#allocation15_spill]]  ;;  %s2080_s24 = sld [smem:[#allocation16_spill]] }
 0x1cc   : > { %s2081_s12 = smov %s1504_s13  ;;  %s2082_s13 = smov %s1508_s14 }
 0x1cd   : > { %s2083_s14 = smov %s1684_s8  ;;  %s2084_s15 = smov %s1516_s16 }
 0x1ce   : > { %s2085_s16 = smov %s1520_s17  ;;  %s2086_s17 = smov %s1750_s5 }
 0x1cf   : > { %s2087_s18 = smov %s1528_s19  ;;  %s2088_s19 = smov %s1532_s20 }
 0x1d0   : > { %s2089_s20 = smov %s1687_s9  ;;  %21 = sbr.rel (!%p1983_p0) target bundleno = 16 (0x10), region = 101 }
 0x1d7   :  { %935 = vsyncpa [#allocation4], 1 }
 0x1d8   :  { %937 = vsyncpa [#allocation4 + $0x1], 1 }
 0x1d9   :  { %938 = vsyncpa [#allocation7], 1 }
 0x1da   :  { %940 = vsyncpa [#allocation7 + $0x1], 1 }
 0x1db   :  { %941 = vsyncpa [#allocation5], 1 }
 0x1dc   :  { %943 = vsyncpa [#allocation5 + $0x1], 1 }

</bundles_post_ra>
